<compile_context>
chip_gen: v7x
topology: tpu7x:2x2x1
jax: 0.10.0
libtpu: 0.0.40
codegen_flags: <defaults>
</compile_context>

<pallas_src>
import math

import jax
import jax.numpy as jnp
from jax.experimental import pallas as pl
from jax.experimental.pallas import tpu as pltpu


# ---------------------------------------------------------------------------
# Primary path: direct HBM->HBM DMA copy (no VMEM round-trip).
# ---------------------------------------------------------------------------
def _make_dma_identity_kernel(chunks):
    """chunks: list of static (start, size) along axis 0, or None for a single
    whole-ref copy (used for 0-d / size-1 leading-dim inputs)."""

    def kernel(x_hbm, o_hbm, sems):
        copies = []
        if chunks is None:
            cp = pltpu.make_async_copy(x_hbm, o_hbm, sems.at[0])
            cp.start()
            copies.append(cp)
        else:
            for c, (start, size) in enumerate(chunks):
                cp = pltpu.make_async_copy(
                    x_hbm.at[pl.ds(start, size)],
                    o_hbm.at[pl.ds(start, size)],
                    sems.at[c],
                )
                cp.start()          # issue all DMAs first ...
                copies.append(cp)
        for cp in copies:            # ... then wait, so they overlap.
            cp.wait()

    return kernel


def identity_forward(x: jax.Array) -> jax.Array:
    """IdentityModule.forward(x): returns an exact copy of x (fresh buffer)."""
    total = int(math.prod(x.shape)) if x.shape else 1
    if total == 0:
        return x  # nothing to move

    # Static chunking along the leading axis (up to 4 concurrent DMAs).
    if x.ndim >= 1 and x.shape[0] >= 2:
        dim0 = x.shape[0]
        n_chunks = min(4, dim0)
        base, rem = divmod(dim0, n_chunks)
        chunks, start = [], 0
        for c in range(n_chunks):
            size = base + (1 if c < rem else 0)
            chunks.append((start, size))
            start += size
    else:
        chunks, n_chunks = None, 1

    itemsize = jnp.dtype(x.dtype).itemsize
    nbytes = total * itemsize

    try:
        out = pl.pallas_call(
            _make_dma_identity_kernel(chunks),
            out_shape=jax.ShapeDtypeStruct(x.shape, x.dtype),
            in_specs=[pl.BlockSpec(memory_space=pl.ANY)],   # raw HBM ref
            out_specs=pl.BlockSpec(memory_space=pl.ANY),    # raw HBM ref
            scratch_shapes=[pltpu.SemaphoreType.DMA((n_chunks,))],
            cost_estimate=pl.CostEstimate(
                flops=0, transcendentals=0, bytes_accessed=2 * nbytes),
        )(x)
        # Force compile + execute here so any lowering/runtime failure of the
        # raw-HBM DMA path is caught and the BlockSpec fallback actually runs.
        return jax.block_until_ready(out)
    except Exception:
        return identity_forward_blockspec(x)


# ---------------------------------------------------------------------------
# Fallback path: BlockSpec tiled copy through VMEM.
# ---------------------------------------------------------------------------
def _copy_block_kernel(x_ref, o_ref):
    o_ref[...] = x_ref[...]


def identity_forward_blockspec(x: jax.Array) -> jax.Array:
    total = int(math.prod(x.shape)) if x.shape else 1
    if total == 0:
        return x
    itemsize = jnp.dtype(x.dtype).itemsize
    nbytes = total * itemsize

    # Small or ragged (not lane-divisible): one full-shape block (always legal,
    # no wrapper-side jnp.pad / slice passes).
    if nbytes <= (8 << 20) or total % 128 != 0:
        # TODO(synk): very large ragged tensors would want a bulk+tail split.
        return pl.pallas_call(
            _copy_block_kernel,
            out_shape=jax.ShapeDtypeStruct(x.shape, x.dtype),
            cost_estimate=pl.CostEstimate(
                flops=0, transcendentals=0, bytes_accessed=2 * nbytes),
        )(x)

    # Large + lane-divisible: lane-dense 2D tiling, ~4 MiB blocks.
    cols = 128
    for c in (4096, 2048, 1024, 512, 256, 128):
        if total % c == 0:
            cols = c
            break
    rows = total // cols
    sublane = 8 * max(1, 4 // itemsize)          # 8 / 16 / 32 rows per vreg
    target_block_bytes = 4 << 20                 # in+out, double-buffered = 16 MiB
    tile_rows = (target_block_bytes // (cols * itemsize)) // sublane * sublane
    tile_rows = max(sublane, min(tile_rows, rows))
    if tile_rows % sublane != 0:                 # only possible when rows < sublane
        tile_rows = rows
    grid_rows = pl.cdiv(rows, tile_rows)         # partial final block is masked
                                                 # (sublane axis only; lanes stay full)
    x2d = x.reshape(rows, cols)
    out2d = pl.pallas_call(
        _copy_block_kernel,
        out_shape=jax.ShapeDtypeStruct((rows, cols), x.dtype),
        grid=(grid_rows,),
        in_specs=[pl.BlockSpec((tile_rows, cols), lambda i: (i, 0))],
        out_specs=pl.BlockSpec((tile_rows, cols), lambda i: (i, 0)),
        compiler_params=pltpu.CompilerParams(
            dimension_semantics=("parallel",),
            vmem_limit_bytes=32 << 20,           # covers v5e's 16 MiB default
        ),
        cost_estimate=pl.CostEstimate(
            flops=0, transcendentals=0, bytes_accessed=2 * nbytes),
    )(x2d)
    return out2d.reshape(x.shape)


if __name__ == "__main__":
    key = jax.random.PRNGKey(0)

    # Small NCHW-like input consistent with a generic image module.
    x = jax.random.normal(key, (2, 4, 16, 16), dtype=jnp.float32)

    # Primary (direct HBM->HBM DMA) path.
    y = jax.block_until_ready(identity_forward(x))
    assert y.shape == x.shape and y.dtype == x.dtype
    assert bool(jnp.all(y == x))

    # Ragged shape (not lane-divisible) through the primary path.
    x2 = jax.random.normal(jax.random.PRNGKey(0), (3, 5, 7), dtype=jnp.float32)
    y2 = jax.block_until_ready(identity_forward(x2))
    assert y2.shape == x2.shape and y2.dtype == x2.dtype
    assert bool(jnp.all(y2 == x2))

    # Explicitly exercise the BlockSpec fallback too.
    y3 = jax.block_until_ready(identity_forward_blockspec(x))
    assert y3.shape == x.shape and y3.dtype == x.dtype
    assert bool(jnp.all(y3 == x))

    y4 = jax.block_until_ready(identity_forward_blockspec(x2))
    assert bool(jnp.all(y4 == x2))

    print("KERNEL_OK")
</pallas_src>

<mosaic_0001>
module attributes {stable_mosaic.version = 11 : i64} {
  func.func @kernel(%arg0: memref<2x4x16x16xf32, #tpu.memory_space<any>>, %arg1: memref<2x4x16x16xf32, #tpu.memory_space<any>>, %arg2: memref<2x!tpu.dma_semaphore, #tpu.memory_space<semaphore_mem>>) attributes {dimension_semantics = [], scalar_prefetch = 0 : i64, scratch_operands = 1 : i64, tpu.core_type = #tpu.core_type<tc>} {
    %c0_i32 = arith.constant 0 : i32
    %c0_i32_0 = arith.constant 0 : i32
    %c0_i32_1 = arith.constant 0 : i32
    %c0_i32_2 = arith.constant 0 : i32
    %c0_i32_3 = arith.constant 0 : i32
    %0 = tpu.memref_slice %arg0[%c0_i32_0, %c0_i32_1, %c0_i32_2, %c0_i32_3] : memref<2x4x16x16xf32, #tpu.memory_space<any>> -> memref<1x4x16x16xf32, #tpu.memory_space<any>>
    %c0_i32_4 = arith.constant 0 : i32
    %c0_i32_5 = arith.constant 0 : i32
    %c0_i32_6 = arith.constant 0 : i32
    %c0_i32_7 = arith.constant 0 : i32
    %1 = tpu.memref_slice %arg1[%c0_i32_4, %c0_i32_5, %c0_i32_6, %c0_i32_7] : memref<2x4x16x16xf32, #tpu.memory_space<any>> -> memref<1x4x16x16xf32, #tpu.memory_space<any>>
    %2 = tpu.memref_slice %arg2[%c0_i32] : memref<2x!tpu.dma_semaphore, #tpu.memory_space<semaphore_mem>> -> memref<1x!tpu.dma_semaphore, #tpu.memory_space<semaphore_mem>>
    %3 = tpu.memref_squeeze %2 : memref<1x!tpu.dma_semaphore, #tpu.memory_space<semaphore_mem>> -> memref<!tpu.dma_semaphore, #tpu.memory_space<semaphore_mem>>
    tpu.enqueue_dma source(%0 : memref<1x4x16x16xf32, #tpu.memory_space<any>>) target(%1 : memref<1x4x16x16xf32, #tpu.memory_space<any>>) target_semaphore(%3 : memref<!tpu.dma_semaphore, #tpu.memory_space<semaphore_mem>>)
    %c1_i32 = arith.constant 1 : i32
    %c1_i32_8 = arith.constant 1 : i32
    %c0_i32_9 = arith.constant 0 : i32
    %c0_i32_10 = arith.constant 0 : i32
    %c0_i32_11 = arith.constant 0 : i32
    %4 = tpu.memref_slice %arg0[%c1_i32_8, %c0_i32_9, %c0_i32_10, %c0_i32_11] : memref<2x4x16x16xf32, #tpu.memory_space<any>> -> memref<1x4x16x16xf32, #tpu.memory_space<any>>
    %c1_i32_12 = arith.constant 1 : i32
    %c0_i32_13 = arith.constant 0 : i32
    %c0_i32_14 = arith.constant 0 : i32
    %c0_i32_15 = arith.constant 0 : i32
    %5 = tpu.memref_slice %arg1[%c1_i32_12, %c0_i32_13, %c0_i32_14, %c0_i32_15] : memref<2x4x16x16xf32, #tpu.memory_space<any>> -> memref<1x4x16x16xf32, #tpu.memory_space<any>>
    %6 = tpu.memref_slice %arg2[%c1_i32] : memref<2x!tpu.dma_semaphore, #tpu.memory_space<semaphore_mem>> -> memref<1x!tpu.dma_semaphore, #tpu.memory_space<semaphore_mem>>
    %7 = tpu.memref_squeeze %6 : memref<1x!tpu.dma_semaphore, #tpu.memory_space<semaphore_mem>> -> memref<!tpu.dma_semaphore, #tpu.memory_space<semaphore_mem>>
    tpu.enqueue_dma source(%4 : memref<1x4x16x16xf32, #tpu.memory_space<any>>) target(%5 : memref<1x4x16x16xf32, #tpu.memory_space<any>>) target_semaphore(%7 : memref<!tpu.dma_semaphore, #tpu.memory_space<semaphore_mem>>)
    %c0_i32_16 = arith.constant 0 : i32
    %c0_i32_17 = arith.constant 0 : i32
    %c0_i32_18 = arith.constant 0 : i32
    %c0_i32_19 = arith.constant 0 : i32
    %c0_i32_20 = arith.constant 0 : i32
    %8 = tpu.memref_slice %arg0[%c0_i32_17, %c0_i32_18, %c0_i32_19, %c0_i32_20] : memref<2x4x16x16xf32, #tpu.memory_space<any>> -> memref<1x4x16x16xf32, #tpu.memory_space<any>>
    %c0_i32_21 = arith.constant 0 : i32
    %c0_i32_22 = arith.constant 0 : i32
    %c0_i32_23 = arith.constant 0 : i32
    %c0_i32_24 = arith.constant 0 : i32
    %9 = tpu.memref_slice %arg1[%c0_i32_21, %c0_i32_22, %c0_i32_23, %c0_i32_24] : memref<2x4x16x16xf32, #tpu.memory_space<any>> -> memref<1x4x16x16xf32, #tpu.memory_space<any>>
    %10 = tpu.memref_slice %arg2[%c0_i32_16] : memref<2x!tpu.dma_semaphore, #tpu.memory_space<semaphore_mem>> -> memref<1x!tpu.dma_semaphore, #tpu.memory_space<semaphore_mem>>
    %11 = tpu.memref_squeeze %10 : memref<1x!tpu.dma_semaphore, #tpu.memory_space<semaphore_mem>> -> memref<!tpu.dma_semaphore, #tpu.memory_space<semaphore_mem>>
    tpu.wait_dma2 semaphore(%11 : memref<!tpu.dma_semaphore, #tpu.memory_space<semaphore_mem>>) src(%8 : memref<1x4x16x16xf32, #tpu.memory_space<any>>) dst(%9 : memref<1x4x16x16xf32, #tpu.memory_space<any>>)
    %c1_i32_25 = arith.constant 1 : i32
    %c1_i32_26 = arith.constant 1 : i32
    %c0_i32_27 = arith.constant 0 : i32
    %c0_i32_28 = arith.constant 0 : i32
    %c0_i32_29 = arith.constant 0 : i32
    %12 = tpu.memref_slice %arg0[%c1_i32_26, %c0_i32_27, %c0_i32_28, %c0_i32_29] : memref<2x4x16x16xf32, #tpu.memory_space<any>> -> memref<1x4x16x16xf32, #tpu.memory_space<any>>
    %c1_i32_30 = arith.constant 1 : i32
    %c0_i32_31 = arith.constant 0 : i32
    %c0_i32_32 = arith.constant 0 : i32
    %c0_i32_33 = arith.constant 0 : i32
    %13 = tpu.memref_slice %arg1[%c1_i32_30, %c0_i32_31, %c0_i32_32, %c0_i32_33] : memref<2x4x16x16xf32, #tpu.memory_space<any>> -> memref<1x4x16x16xf32, #tpu.memory_space<any>>
    %14 = tpu.memref_slice %arg2[%c1_i32_25] : memref<2x!tpu.dma_semaphore, #tpu.memory_space<semaphore_mem>> -> memref<1x!tpu.dma_semaphore, #tpu.memory_space<semaphore_mem>>
    %15 = tpu.memref_squeeze %14 : memref<1x!tpu.dma_semaphore, #tpu.memory_space<semaphore_mem>> -> memref<!tpu.dma_semaphore, #tpu.memory_space<semaphore_mem>>
    tpu.wait_dma2 semaphore(%15 : memref<!tpu.dma_semaphore, #tpu.memory_space<semaphore_mem>>) src(%12 : memref<1x4x16x16xf32, #tpu.memory_space<any>>) dst(%13 : memref<1x4x16x16xf32, #tpu.memory_space<any>>)
    return
  }
}

module attributes {stable_mosaic.version = 11 : i64} {
  func.func @_copy_block_kernel(%arg0: memref<2x4x16x16xf32, #tpu.memory_space<vmem>>, %arg1: memref<2x4x16x16xf32, #tpu.memory_space<vmem>>) attributes {dimension_semantics = [], scalar_prefetch = 0 : i64, scratch_operands = 0 : i64, tpu.core_type = #tpu.core_type<tc>} {
    %c0 = arith.constant 0 : index
    %c0_0 = arith.constant 0 : index
    %c0_1 = arith.constant 0 : index
    %c0_2 = arith.constant 0 : index
    %0 = vector.load %arg0[%c0, %c0_0, %c0_1, %c0_2] : memref<2x4x16x16xf32, #tpu.memory_space<vmem>>, vector<2x4x16x16xf32>
    %c0_3 = arith.constant 0 : index
    %c0_4 = arith.constant 0 : index
    %c0_5 = arith.constant 0 : index
    %c0_6 = arith.constant 0 : index
    %1 = vector.load %arg1[%c0_3, %c0_4, %c0_5, %c0_6] : memref<2x4x16x16xf32, #tpu.memory_space<vmem>>, vector<2x4x16x16xf32>
    tpu.vector_store %arg1[%c0_3, %c0_4, %c0_5, %c0_6], %0 {strides = array<i32>} : memref<2x4x16x16xf32, #tpu.memory_space<vmem>>, vector<2x4x16x16xf32>,
    return
  }
}

</mosaic_0001>

<bundles_post_ra>
// kernel: tpu_custom_call.1
= control target key start
LH: loop header
LB: loop body
LE: loop exit
PB: predicated region body
PF: predicated region fallthrough
CT: control target
= control target key end

     0   :  { %6 = vsyncpa [#allocation3], 0  ;;  %s185_s0 = inlined_call_operand.hbm [shape: f32[2,4,16,16], index: 0, kind: input, shape index: {}]   ;;  %s186_s1 = inlined_call_operand.hbm [shape: f32[2,4,16,16], index: 1, kind: output, shape index: {}]  }
   0x1   :  { %7 = vsyncpa [#allocation4], 0  ;;  %s125_s6 = smov [#allocation2]   ;;  %s77_s10 = scalar_lea.hbm %s185_s0, 2048 }
   0x2   :  { %s13_s7 = sshll.u32 %s125_s6, 4  ;;  %p78_p0 = scmp.ne.s32.totalorder %s185_s0, %s77_s10  ;;  %s14_s7 = int_to_ptr.vmem [resolvable:$true] %s13_s7 }
   0x3   :  { %p81_p1 = scmp.lt.u32.totalorder %s77_s10, %s185_s0 }
   0x5   :  { %p83_p2 = pnand %p81_p1, %p78_p0 }
   0x7   :  { %86 = shalt.err (!%p83_p2)
}
   0x8   :  { %s87_s15 = scalar_lea.vmem %s14_s7, 2048  ;;  %p92_p4 = scmp.lt.s32.totalorder %s14_s7, %s14_s7 }
   0x9   :  { %p88_p3 = scmp.ne.s32.totalorder %s14_s7, %s87_s15  ;;  %p93_p5 = scmp.lt.s32.totalorder %s87_s15, %s87_s15 }
   0xb   :  { %p94_p6 = por %p93_p5, %p92_p4 }
   0xd   :  { %p95_p7 = pnand %p94_p6, %p88_p3 }
   0xf   :  { %98 = shalt.err (!%p95_p7)
}
  0x10   :  { %s126_s16 = smov 128   ;;  %s127_s17 = smov 8  }
  0x11   :  { %19 = dma.hbm_to_vmem [thread:$0]  %s185_s0, 2048, %s14_s7, [#allocation3], %s126_s16, %s126_s16, %s127_s17  }
  0x12   :  { %121 = dma.done.wait [#allocation3], 2048  }
  0x13   :  { %122 = vsyncadd [#allocation3], 4294965248  ;;  %vm39_vm0 = vcmask 130048   ;;  %v23_v0 = vld [vmem:[#allocation2] sm:$0xff]  ;;  %v24_v1 = vld [vmem:[#allocation2 + $0x8] sm:$0xff]  ;;  %s128_s20 = smov [#allocation5]  }
  0x14   :  { %v25_v2 = vld [vmem:[#allocation2 + $0x10] sm:$0xff]  ;;  %40 = vst.msk [vmem:[#allocation5] sm:$0xff] %vm39_vm0, %v23_v0  ;;  %41 = vst.msk [vmem:[#allocation5 + $0x8] sm:$0xff] %vm39_vm0, %v24_v1  ;;  %v26_v3 = vld [vmem:[#allocation2 + $0x18] sm:$0xff]  ;;  %s61_s21 = sshll.u32 %s128_s20, 4  ;;  %s62_s21 = int_to_ptr.vmem [resolvable:$true] %s61_s21 }
  0x15   :  { %42 = vst.msk [vmem:[#allocation5 + $0x10] sm:$0xff] %vm39_vm0, %v25_v2  ;;  %v27_v4 = vld [vmem:[#allocation2 + $0x20] sm:$0xff]  ;;  %v28_v5 = vld [vmem:[#allocation2 + $0x28] sm:$0xff]  ;;  %43 = vst.msk [vmem:[#allocation5 + $0x18] sm:$0xff] %vm39_vm0, %v26_v3  ;;  %s99_s0 = scalar_lea.vmem %s62_s21, 2048  ;;  %p104_p9 = scmp.lt.s32.totalorder %s62_s21, %s62_s21 }
  0x16   :  { %44 = vst.msk [vmem:[#allocation5 + $0x20] sm:$0xff] %vm39_vm0, %v27_v4  ;;  %45 = vst.msk [vmem:[#allocation5 + $0x28] sm:$0xff] %vm39_vm0, %v28_v5  ;;  %v29_v6 = vld [vmem:[#allocation2 + $0x30] sm:$0xff]  ;;  %v30_v7 = vld [vmem:[#allocation2 + $0x38] sm:$0xff]  ;;  %p100_p8 = scmp.ne.s32.totalorder %s62_s21, %s99_s0  ;;  %p105_p10 = scmp.lt.s32.totalorder %s99_s0, %s99_s0 }
  0x17   :  { %v31_v8 = vld [vmem:[#allocation2 + $0x40] sm:$0xff]  ;;  %46 = vst.msk [vmem:[#allocation5 + $0x30] sm:$0xff] %vm39_vm0, %v29_v6  ;;  %47 = vst.msk [vmem:[#allocation5 + $0x38] sm:$0xff] %vm39_vm0, %v30_v7  ;;  %v32_v9 = vld [vmem:[#allocation2 + $0x48] sm:$0xff] }
  0x18   :  { %48 = vst.msk [vmem:[#allocation5 + $0x40] sm:$0xff] %vm39_vm0, %v31_v8  ;;  %v33_v10 = vld [vmem:[#allocation2 + $0x50] sm:$0xff]  ;;  %v34_v11 = vld [vmem:[#allocation2 + $0x58] sm:$0xff]  ;;  %49 = vst.msk [vmem:[#allocation5 + $0x48] sm:$0xff] %vm39_vm0, %v32_v9  ;;  %p106_p11 = por %p105_p10, %p104_p9 }
  0x19   :  { %50 = vst.msk [vmem:[#allocation5 + $0x50] sm:$0xff] %vm39_vm0, %v33_v10  ;;  %51 = vst.msk [vmem:[#allocation5 + $0x58] sm:$0xff] %vm39_vm0, %v34_v11  ;;  %v35_v12 = vld [vmem:[#allocation2 + $0x60] sm:$0xff]  ;;  %v36_v13 = vld [vmem:[#allocation2 + $0x68] sm:$0xff] }
  0x1a   :  { %v37_v14 = vld [vmem:[#allocation2 + $0x70] sm:$0xff]  ;;  %52 = vst.msk [vmem:[#allocation5 + $0x60] sm:$0xff] %vm39_vm0, %v35_v12  ;;  %53 = vst.msk [vmem:[#allocation5 + $0x68] sm:$0xff] %vm39_vm0, %v36_v13  ;;  %v38_v15 = vld [vmem:[#allocation2 + $0x78] sm:$0xff]  ;;  %p107_p12 = pnand %p106_p11, %p100_p8 }
  0x1b   :  { %54 = vst.msk [vmem:[#allocation5 + $0x70] sm:$0xff] %vm39_vm0, %v37_v14  ;;  %55 = vst.msk [vmem:[#allocation5 + $0x78] sm:$0xff] %vm39_vm0, %v38_v15 }
  0x1c   :  { %110 = shalt.err (!%p107_p12)
}
  0x1d   :  { %s111_s24 = scalar_lea.hbm %s186_s1, 2048 }
  0x1e   :  { %p112_p13 = scmp.ne.s32.totalorder %s186_s1, %s111_s24  ;;  %p115_p0 = scmp.lt.u32.totalorder %s111_s24, %s186_s1 }
  0x20   :  { %p117_p1 = pnand %p115_p0, %p112_p13 }
  0x22   :  { %120 = shalt.err (!%p117_p1)
}
  0x23   :  { %67 = dma.vmem_to_hbm [thread:$0]  %s62_s21, 2048, %s186_s1, [#allocation4], %s126_s16, %s126_s16, %s127_s17  }
  0x24   :  { %123 = dma.done.wait [#allocation4], 2048  }
  0x25   :  { %124 = vsyncadd [#allocation4], 4294965248 }
  0x26   :  { %71 = vsyncpa [#allocation3], 1 }
  0x27   :  { %72 = vsyncpa [#allocation4], 1 }

</bundles_post_ra>
